<compile_context>
chip_gen: v7x
topology: tpu7x:2x2x1
jax: 0.10.0
libtpu: 0.0.40
codegen_flags: <defaults>
</compile_context>

<pallas_src>
import functools

import jax
import jax.numpy as jnp
from jax import lax
from jax.experimental import pallas as pl
from jax.experimental.pallas import tpu as pltpu


_LAYER_WEIGHTS = (64, 128, 256, 512, 512)
_FEATURE_DTYPE = jnp.bfloat16        # streamed feature dtype (f32 accumulate)
_LANE = 128
_TK_CAP = 8192                       # max lane (HW) tile width
_PALLAS_MIN_ELEMS = 1 << 15          # per-batch C*HW below this -> XLA einsum


def _round_up(x, m):
    return ((x + m - 1) // m) * m


@functools.lru_cache(maxsize=None)
def _vmem_limit_bytes():
    """Generation-aware scoped-VMEM limit: ~48 MiB on v7x, 64 MiB on v5e/v6e."""
    cap = None
    try:
        info = pltpu.get_tpu_info()
        cap = getattr(info, "vmem_capacity_bytes", None)
    except Exception:
        cap = None
    if not cap:
        cap = 64 * 1024 * 1024       # conservative fallback (v7x physical VMEM)
    return min(64 * 1024 * 1024, (int(cap) * 3) // 4)


def _choose_tk(c_pad, hw, feat_itemsize, gt_bytes, vmem_limit):
    """Largest 128-multiple HW tile whose double-buffered tiles fit the budget."""
    acc_bytes = c_pad * c_pad * 4
    budget = vmem_limit - acc_bytes - 2 * gt_bytes - 4 * 1024 * 1024
    per_col = 2 * c_pad * feat_itemsize          # double-buffered bytes per HW col
    tk = max(budget, per_col * _LANE) // per_col
    tk = max(_LANE, (tk // _LANE) * _LANE)
    tk = min(tk, _TK_CAP)
    tk = min(tk, _round_up(hw, _LANE))
    return tk


def _as_b_c_hw(y):
    if y.ndim == 4:
        b, c, h, w = y.shape
        return y.reshape(b, c, h * w)
    assert y.ndim == 3, "expected (B, C, H, W) or (B, C, HW)"
    return y


def _prep_features(y, feature_dtype):
    """-> (B, c_pad, HW) in feature_dtype; sublane-pads C only when needed."""
    f = _as_b_c_hw(y)
    if f.dtype != feature_dtype:
        # Ideally the feature extractor already emits bf16; this cast is the
        # fallback for f32 inputs.
        f = f.astype(feature_dtype)
    c_mult = 16 if feature_dtype == jnp.bfloat16 else 8
    B, C, HW = f.shape
    c_pad = _round_up(C, c_mult)
    if c_pad != C:
        f = jnp.pad(f, ((0, 0), (0, c_pad - C), (0, 0)))
    return f, C, HW


# ----------------------------------------------------------------------------
# Shared per-step Gram accumulation:
#   f_ref : (1, c_pad, TK) bf16 feature tile (HW on lanes)
#   acc   : (c_pad, c_pad) f32 resident accumulator scratch
# ----------------------------------------------------------------------------
def _gram_acc(f_ref, acc_ref, *, hw, tk):
    k = pl.program_id(1)

    @pl.when(k == 0)
    def _():
        acc_ref[...] = jnp.zeros_like(acc_ref)

    f = f_ref[0]                                             # (c_pad, tk)
    if hw % tk != 0:
        # Ragged last HW tile: out-of-bounds lanes of the block hold garbage;
        # zero them before the contraction (all-true on non-last steps).
        col = lax.broadcasted_iota(jnp.int32, (1, tk), 1)
        f = jnp.where(col < (hw - k * tk), f, jnp.zeros_like(f))
    acc_ref[...] += lax.dot_general(
        f, f,
        dimension_numbers=(((1,), (1,)), ((), ())),          # F @ F^T
        preferred_element_type=jnp.float32)


# Kernel 1: batched Gram matrix, tiled HW reduction. grid = (B, cdiv(HW, TK)).
def _gram_kernel(f_ref, g_ref, acc_ref, *, inv_hw, hw, tk):
    _gram_acc(f_ref, acc_ref, hw=hw, tk=tk)

    @pl.when(pl.program_id(1) == pl.num_programs(1) - 1)
    def _():
        g_ref[0] = (acc_ref[...] * inv_hw).astype(g_ref.dtype)


# Kernel 2: fused Gram + squared error vs a constant-in-k target Gram block;
# per-batch SSE partial written once in the epilogue.
def _gram_mse_kernel(f_ref, gt_ref, o_ref, acc_ref, *, inv_hw, hw, tk):
    _gram_acc(f_ref, acc_ref, hw=hw, tk=tk)

    @pl.when(pl.program_id(1) == pl.num_programs(1) - 1)
    def _():
        d = acc_ref[...] * inv_hw - gt_ref[0]
        o_ref[0, 0, 0] = jnp.sum(d * d)


def _gram_pallas(feat, tk):
    B, c_pad, hw = feat.shape
    nk = pl.cdiv(hw, tk)
    fb = jnp.dtype(feat.dtype).itemsize
    cost = pl.CostEstimate(
        flops=2 * B * c_pad * c_pad * hw,
        transcendentals=0,
        bytes_accessed=fb * B * c_pad * hw + 4 * B * c_pad * c_pad)
    return pl.pallas_call(
        functools.partial(_gram_kernel, inv_hw=1.0 / float(hw), hw=hw, tk=tk),
        out_shape=jax.ShapeDtypeStruct((B, c_pad, c_pad), jnp.float32),
        grid_spec=pltpu.PrefetchScalarGridSpec(
            num_scalar_prefetch=0,
            grid=(B, nk),
            in_specs=[pl.BlockSpec((1, c_pad, tk), lambda b, k: (b, 0, k))],
            out_specs=pl.BlockSpec((1, c_pad, c_pad), lambda b, k: (b, 0, 0)),
            scratch_shapes=[pltpu.VMEM((c_pad, c_pad), jnp.float32)]),
        compiler_params=pltpu.CompilerParams(
            dimension_semantics=("parallel", "arbitrary"),
            vmem_limit_bytes=_vmem_limit_bytes()),
        cost_estimate=cost,
    )(feat)


def _gram_mse_pallas(feat, gt, tk):
    B, c_pad, hw = feat.shape
    nk = pl.cdiv(hw, tk)
    fb = jnp.dtype(feat.dtype).itemsize
    cost = pl.CostEstimate(
        flops=2 * B * c_pad * c_pad * hw + 3 * B * c_pad * c_pad,
        transcendentals=0,
        bytes_accessed=fb * B * c_pad * hw + 4 * B * c_pad * c_pad + 4 * B)
    return pl.pallas_call(
        functools.partial(_gram_mse_kernel, inv_hw=1.0 / float(hw), hw=hw, tk=tk),
        out_shape=jax.ShapeDtypeStruct((B, 1, 1), jnp.float32),
        grid_spec=pltpu.PrefetchScalarGridSpec(
            num_scalar_prefetch=0,
            grid=(B, nk),
            in_specs=[
                pl.BlockSpec((1, c_pad, tk), lambda b, k: (b, 0, k)),
                pl.BlockSpec((1, c_pad, c_pad), lambda b, k: (b, 0, 0)),
            ],
            out_specs=pl.BlockSpec((1, 1, 1), lambda b, k: (b, 0, 0)),
            scratch_shapes=[pltpu.VMEM((c_pad, c_pad), jnp.float32)]),
        compiler_params=pltpu.CompilerParams(
            dimension_semantics=("parallel", "arbitrary"),
            vmem_limit_bytes=_vmem_limit_bytes()),
        cost_estimate=cost,
    )(feat, gt)


# ----------------------------------------------------------------------------
# Public API
# ----------------------------------------------------------------------------
def gram_matrix(y, *, tk=None):
    """Batched Gram matrix G = F @ F^T / (H*W), F = y.view(B, C, H*W) -> f32."""
    f, C, HW = _prep_features(y, _FEATURE_DTYPE)
    B, c_pad, _ = f.shape
    if tk is None and C * HW < _PALLAS_MIN_ELEMS:
        fe = f if c_pad == C else f[:, :C]
        return jnp.einsum("bcs,bds->bcd", fe, fe,
                          preferred_element_type=jnp.float32) / jnp.float32(HW)
    if tk is None:
        tk = _choose_tk(c_pad, HW, jnp.dtype(_FEATURE_DTYPE).itemsize, 0,
                        _vmem_limit_bytes())
    return _gram_pallas(f, tk)[:, :C, :C]


@jax.jit
def style_loss_gatys(image_features, gram_targets):
    """sum_i 1000 / w[i]^2 * mean((gram(F_i) - G_i)^2), w = [64,128,256,512,512]."""
    loss = jnp.float32(0.0)
    vmem_limit = _vmem_limit_bytes()
    for i, (ft, gt) in enumerate(zip(image_features, gram_targets)):
        f, C, HW = _prep_features(ft, _FEATURE_DTYPE)
        B, c_pad, _ = f.shape
        scale = jnp.float32(1000.0 / float(_LAYER_WEIGHTS[i]) ** 2)
        if C * HW < _PALLAS_MIN_ELEMS:
            # Tiny deep layers: kernel-launch overhead dominates; let XLA fuse.
            fe = f if c_pad == C else f[:, :C]
            g = jnp.einsum("bcs,bds->bcd", fe, fe,
                           preferred_element_type=jnp.float32) / jnp.float32(HW)
            mse = jnp.mean((g - gt) ** 2)
        else:
            gt_p = gt if c_pad == C else jnp.pad(
                gt, ((0, 0), (0, c_pad - C), (0, c_pad - C)))
            tk = _choose_tk(c_pad, HW, jnp.dtype(_FEATURE_DTYPE).itemsize,
                            c_pad * c_pad * 4, vmem_limit)
            sumsq = jnp.sum(_gram_mse_pallas(f, gt_p, tk))
            mse = sumsq / jnp.float32(B * C * C)
        loss = loss + scale * mse
    return loss


if __name__ == "__main__":
    key = jax.random.PRNGKey(0)
    batch = 2
    # Small VGG-like style-feature shapes (NCHW), one per style layer.
    layer_shapes = [
        (batch, 64, 32, 32),    # -> Pallas fused Gram+MSE kernel
        (batch, 128, 16, 16),   # -> Pallas fused Gram+MSE kernel
        (batch, 256, 8, 8),     # tiny -> XLA einsum path
        (batch, 512, 4, 4),     # tiny -> XLA einsum path
        (batch, 512, 2, 2),     # tiny -> XLA einsum path
    ]
    keys = jax.random.split(key, 2 * len(layer_shapes) + 1)

    # "Style image" features (module __init__) -> target Gram matrices.
    # Features are produced in bf16 (the extractor would emit bf16), so the
    # loss kernels stream half the bytes of f32.
    style_features = [
        jax.random.normal(keys[i], s, dtype=jnp.float32).astype(_FEATURE_DTYPE)
        for i, s in enumerate(layer_shapes)
    ]
    gram_matrix_target = [gram_matrix(y) for y in style_features]

    # "Image" features (module forward input, post-VGG).
    image_features = [
        jax.random.normal(keys[len(layer_shapes) + i], s,
                          dtype=jnp.float32).astype(_FEATURE_DTYPE)
        for i, s in enumerate(layer_shapes)
    ]

    loss = style_loss_gatys(image_features, gram_matrix_target)
    jax.block_until_ready(loss)

    # ---- pure-JAX references on the same bf16-valued inputs -----------------
    def ref_gram(y):
        b, c, h, w = y.shape
        fr = y.reshape(b, c, h * w).astype(jnp.float32)
        return jnp.einsum("bcs,bds->bcd", fr, fr) / float(h * w)

    for y, g_k in zip(style_features, gram_matrix_target):
        assert jnp.allclose(g_k, ref_gram(y), rtol=1e-4, atol=1e-4), "gram mismatch"

    ref = jnp.float32(0.0)
    for i, (ft, gt) in enumerate(zip(image_features, gram_matrix_target)):
        ref = ref + (1000.0 / float(_LAYER_WEIGHTS[i]) ** 2) * jnp.mean(
            (ref_gram(ft) - gt) ** 2)
    assert jnp.allclose(loss, ref, rtol=1e-3, atol=1e-6), (loss, ref)

    # Directly exercise the tiled multi-k reduction + ragged-tail masking path.
    f_ragged = jax.random.normal(keys[-1], (2, 96, 1000),
                                 dtype=jnp.float32).astype(_FEATURE_DTYPE)
    g_pal = _gram_pallas(f_ragged, tk=256)          # 4 k-steps, ragged last tile
    fr = f_ragged.astype(jnp.float32)
    g_ref = jnp.einsum("bcs,bds->bcd", fr, fr) / 1000.0
    assert jnp.allclose(g_pal, g_ref, rtol=1e-4, atol=1e-4), "ragged gram mismatch"

    # Directly exercise multi-k through the fused Gram+MSE kernel.
    f0 = image_features[0].reshape(batch, 64, 32 * 32)
    gt0 = gram_matrix_target[0]
    sumsq = jnp.sum(_gram_mse_pallas(f0, gt0, tk=256))      # 4 k-steps
    sse_ref = jnp.sum((ref_gram(image_features[0]) - gt0) ** 2)
    assert jnp.allclose(sumsq, sse_ref, rtol=1e-3, atol=1e-5), "fused mse mismatch"

    print("KERNEL_OK")
</pallas_src>

<mosaic_0001>
module attributes {stable_mosaic.version = 11 : i64} {
  func.func @_gram_kernel(%arg0: i32, %arg1: i32, %arg2: memref<1x64x1024xbf16, #tpu.memory_space<vmem>>, %arg3: memref<1x64x64xf32, #tpu.memory_space<vmem>>, %arg4: memref<64x64xf32, #tpu.memory_space<vmem>>) attributes {dimension_semantics = [#tpu.dimension_semantics<parallel>, #tpu.dimension_semantics<arbitrary>], iteration_bounds = array<i64: 2, 1>, scalar_prefetch = 0 : i64, scratch_operands = 1 : i64, tpu.core_type = #tpu.core_type<tc>, window_params = [{transform_indices = @transform_0, window_bounds = array<i64: 1, 64, 1024>}, {transform_indices = @transform_1, window_bounds = array<i64: 1, 64, 64>}]} {
    %c0_i32 = arith.constant 0 : i32
    %0 = arith.cmpi eq, %arg1, %c0_i32 : i32
    %1 = arith.extui %0 : i1 to i32
    %c0_i32_0 = arith.constant 0 : i32
    %2 = arith.cmpi ne, %1, %c0_i32_0 : i32
    scf.if %2 {
      %cst_9 = arith.constant 0.000000e+00 : f32
      %12 = vector.broadcast %cst_9 : f32 to vector<64x64xf32>
      %c0_10 = arith.constant 0 : index
      %c0_11 = arith.constant 0 : index
      %13 = vector.load %arg4[%c0_10, %c0_11] : memref<64x64xf32, #tpu.memory_space<vmem>>, vector<64x64xf32>
      tpu.vector_store %arg4[%c0_10, %c0_11], %12 {strides = array<i32>} : memref<64x64xf32, #tpu.memory_space<vmem>>, vector<64x64xf32>,
    } else {
    }
    %c0 = arith.constant 0 : index
    %c0_1 = arith.constant 0 : index
    %c0_2 = arith.constant 0 : index
    %3 = vector.load %arg2[%c0, %c0_1, %c0_2] : memref<1x64x1024xbf16, #tpu.memory_space<vmem>>, vector<1x64x1024xbf16>
    %4 = vector.shape_cast %3 : vector<1x64x1024xbf16> to vector<64x1024xbf16>
    %c0_3 = arith.constant 0 : index
    %c0_4 = arith.constant 0 : index
    %5 = vector.load %arg4[%c0_3, %c0_4] : memref<64x64xf32, #tpu.memory_space<vmem>>, vector<64x64xf32>
    %cst = arith.constant dense<0.000000e+00> : vector<64x64xf32>
    %6 = tpu.matmul %4, %4, %cst {dimension_numbers = #tpu.dot_dimension_numbers<[1], [1], [0], [0], [0, 0, 1, 0], [], []>} : vector<64x1024xbf16>, vector<64x1024xbf16>, vector<64x64xf32> -> vector<64x64xf32>
    %7 = arith.addf %5, %6 : vector<64x64xf32>
    %c0_5 = arith.constant 0 : index
    %c0_6 = arith.constant 0 : index
    %8 = vector.load %arg4[%c0_5, %c0_6] : memref<64x64xf32, #tpu.memory_space<vmem>>, vector<64x64xf32>
    tpu.vector_store %arg4[%c0_5, %c0_6], %7 {strides = array<i32>} : memref<64x64xf32, #tpu.memory_space<vmem>>, vector<64x64xf32>,
    %c0_i32_7 = arith.constant 0 : i32
    %9 = arith.cmpi eq, %arg1, %c0_i32_7 : i32
    %10 = arith.extui %9 : i1 to i32
    %c0_i32_8 = arith.constant 0 : i32
    %11 = arith.cmpi ne, %10, %c0_i32_8 : i32
    scf.if %11 {
      %c0_9 = arith.constant 0 : index
      %c0_10 = arith.constant 0 : index
      %12 = vector.load %arg4[%c0_9, %c0_10] : memref<64x64xf32, #tpu.memory_space<vmem>>, vector<64x64xf32>
      %cst_11 = arith.constant 9.765625E-4 : f32
      %13 = vector.broadcast %cst_11 : f32 to vector<64x64xf32>
      %14 = arith.mulf %12, %13 : vector<64x64xf32>
      %c0_12 = arith.constant 0 : index
      %c0_13 = arith.constant 0 : index
      %c0_14 = arith.constant 0 : index
      %15 = vector.load %arg3[%c0_12, %c0_13, %c0_14] : memref<1x64x64xf32, #tpu.memory_space<vmem>>, vector<1x64x64xf32>
      %16 = vector.shape_cast %15 : vector<1x64x64xf32> to vector<64x64xf32>
      %17 = vector.shape_cast %14 : vector<64x64xf32> to vector<1x64x64xf32>
      tpu.vector_store %arg3[%c0_12, %c0_13, %c0_14], %17 {strides = array<i32>} : memref<1x64x64xf32, #tpu.memory_space<vmem>>, vector<1x64x64xf32>,
    } else {
    }
    return
  }
  func.func @transform_0(%arg0: i32, %arg1: i32) -> (i32, i32, i32) {
    %c0_i32 = arith.constant 0 : i32
    %c0_i32_0 = arith.constant 0 : i32
    return %arg0, %c0_i32, %arg1 : i32, i32, i32
  }
  func.func @transform_1(%arg0: i32, %arg1: i32) -> (i32, i32, i32) {
    %c0_i32 = arith.constant 0 : i32
    %c0_i32_0 = arith.constant 0 : i32
    %c0_i32_1 = arith.constant 0 : i32
    return %arg0, %c0_i32, %c0_i32_0 : i32, i32, i32
  }
}

</mosaic_0001>

<bundles_post_ra>
// kernel: tpu_custom_call.1
= control target key start
LH: loop header
LB: loop body
LE: loop exit
PB: predicated region body
PF: predicated region fallthrough
CT: control target
= control target key end

     0   :  { %6 = vsyncpa [#allocation4], 0  ;;  %s1269_s0 = inlined_call_operand.hbm [shape: bf16[2,64,1024], index: 0, kind: input, shape index: {}]   ;;  %s1270_s1 = inlined_call_operand.hbm [shape: f32[2,64,64], index: 1, kind: output, shape index: {}]  }
   0x1   :  { %8 = vsyncpa [#allocation4 + $0x1], 0 }
   0x2   :  { %9 = vsyncpa [#allocation5], 0 }
   0x3   :  { %11 = vsyncpa [#allocation5 + $0x1], 0  ;;  %s1015_s6 = smov 0   ;;  %s1017_s7 = smov 0  }
   0x4   :  { %s1019_s8 = smov 0   ;;  %s1021_s9 = smov 0  }
   0x5   :  { %s1023_s10 = smov 0   ;;  %s1025_s11 = smov 0  }
   0x6 LB: > { %s768_s12 = sadd.s32 4294967295, %s996_s11   ;;  %s769_s13 = sadd.s32 4294967294, %s996_s11   ;;  %s996_s11 = sphi %s1025_s11, %s17_s11   ;;  %s992_s10 = sphi %s1023_s10, %s1285_s10   ;;  %s988_s9 = sphi %s1021_s9, %s1284_s9   ;;  %s984_s8 = sphi %s1019_s8, %s1283_s8   ;;  %s980_s7 = sphi %s1017_s7, %s1282_s7   ;;  %s976_s6 = sphi %s1015_s6, %s1281_s6  }
   0x7   : > { %s29_s14 = sadd.s32 1, %s992_s10  ;;  %s38_s15 = sadd.s32 1, %s984_s8 }
   0x8   : > { %p31_p0 = scmp.ge.s32.totalorder %s29_s14, 2  ;;  %p45_p1 = scmp.ne.s32.totalorder %s984_s8, %s980_s7 }
   0x9   : > { %p46_p2 = scmp.eq.s32.totalorder %s996_s11, 0  ;;  %p51_p3 = scmp.ne.s32.totalorder %s980_s7, %s976_s6 }
   0xa   : > { %s1287_s14 = smov (%p31_p0, %s29_s14), 0  ;;  %p52_p5 = scmp.eq.s32.totalorder %s768_s12, 0 }
   0xb   : > { %p1056_p4 = por %p46_p2, %p45_p1  ;;  %s33_s17 = ssub.s32 %s992_s10, %s1287_s14 }
   0xc   : > { %p75_p6 = scmp.eq.s32.totalorder %s768_s12, 1  ;;  %p36_p7 = scmp.eq.s32.totalorder %s33_s17, 0 }
   0xd   : > { %p1062_p8 = por %p52_p5, %p51_p3  ;;  %p81_p10 = scmp.eq.s32.totalorder %s769_s13, 1 }
   0xe   : > { %p1066_p9 = por %p75_p6, %p45_p1  ;;  %p829_p13 = scmp.lt.s32.totalorder %s996_s11, 2 }
   0xf   : > { %s1071_s20 = scalar_select %p36_p7, %s984_s8, %s38_s15  }
  0x10   : > { %s1274_s19 = scalar_select %p1066_p9, 1, 0 }
  0x11   : > { %p1073_p11 = por %p81_p10, %p51_p3  ;;  %s101_s22 = sand.u32 1, %s984_s8  }
  0x12   : > { %s772_s23 = sshll.u32 %s101_s22, 8  ;;  %s815_s24 = sshll.u32 %s992_s10, 12 }
  0x13   : > { %s1275_s21 = scalar_select %p1073_p11, 1, 0 }
  0x14   : > { %s1084_s27 = scalar_lea.hbm %s1269_s0, %s815_s24  ;;  %s105_s28 = scalar_lea.vmem [#allocation3], %s772_s23 }
  0x15   : > { %s114_s29 = sshll.u32 %s105_s28, 4  ;;  %p1090_p0 = pnand %p829_p13, %p1056_p4  ;;  %s1086_s29 = int_to_ptr.vmem [resolvable:$true] %s114_s29 }
  0x16   : > { %s1095_s2 = scalar_lea.sflag [#allocation4], %s101_s22  ;;  %s884_s3 = scalar_lea.hbm %s1084_s27, 4096 }
  0x17   : > { %p885_p2 = scmp.ne.s32.totalorder %s1084_s27, %s884_s3  ;;  %p886_p3 = pneg %p1090_p0 }
  0x18   : > { %s889_s12 = scalar_lea.hbm %s1269_s0, 8192  ;;  %p890_p4 = scmp.lt.u32.totalorder %s1084_s27, %s1269_s0 }
  0x19   : > { %p887_p5 = pnand %p886_p3, %p885_p2  ;;  %p891_p7 = scmp.lt.u32.totalorder %s889_s12, %s884_s3 }
  0x1a   : > { %p893_p13 = scmp.lt.u32.totalorder %s884_s3, %s1084_s27 }
  0x1b   : > { %p888_p6 = pneg %p887_p5  ;;  %p892_p10 = por %p891_p7, %p890_p4 }
  0x1d   : > { %p894_p12 = por %p893_p13, %p892_p10 }
  0x1f   : > { %p895_p1 = pnand %p894_p12, %p888_p6 }
  0x21   : > { %898 = shalt.err (!%p895_p1)
}
  0x22   : > { %s899_s16 = scalar_lea.vmem %s1086_s29, 4096  ;;  %s998_s17 = smov [#allocation3]  }
  0x23   : > { %p900_p2 = scmp.ne.s32.totalorder %s1086_s29, %s899_s16  ;;  %s904_s22 = sshll.u32 %s998_s17, 4  ;;  %s905_s22 = int_to_ptr.vmem [resolvable:$false] %s904_s22 }
  0x24   : > { %s906_s23 = scalar_lea.vmem %s905_s22, 8192  ;;  %p907_p9 = scmp.lt.s32.totalorder %s1086_s29, %s905_s22 }
  0x25   : > { %p902_p5 = pnand %p900_p2, %p886_p3  ;;  %p908_p4 = scmp.lt.s32.totalorder %s906_s23, %s899_s16 }
  0x27   : > { %p903_p11 = pneg %p902_p5  ;;  %p909_p7 = por %p908_p4, %p907_p9 }
  0x29   : > { %p910_p10 = pnand %p909_p7, %p903_p11 }
  0x2b   : > { %913 = shalt.err (!%p910_p10)
}
  0x2c   : > { %s999_s24 = smov 512   ;;  %s1000_s25 = smov 32  }
  0x2d   : > { %824 = dma.hbm_to_vmem [thread:$0]  (!%p1090_p0), %s1084_s27, 4096, %s1086_s29, %s1095_s2, %s999_s24, %s999_s24, %s1000_s25  }
  0x2e   : > { %p122_p12 = scmp.lt.s32.totalorder %s996_s11, 3  ;;  %p1277_p1 = scmp.ge.s32.totalorder %s996_s11, 1 }
  0x30   : > { %p123_p3 = pnand %p1277_p1, %p122_p12 }
  0x31   : > { %s1127_s26 = sand.u32 (!%p123_p3), 1, %s980_s7  }
  0x32   : > { %126 = sbr.rel (%p123_p3) target bundleno = 395 (0x18b), region = 24  ;;  %s776_s28 = sshll.u32 (!%p123_p3), %s1127_s26, 8 }
  0x33   : > { %s129_s3 = scalar_lea.sflag (!%p123_p3), [#allocation4], %s1127_s26  ;;  %s1131_s4 = scalar_lea.vmem (!%p123_p3), [#allocation3], %s776_s28 }
  0x39   : > { %967 = dma.done.wait (%p1062_p8), %s129_s3, 4096  }
  0x3a   : > { %969 = vsyncadd (%p1062_p8), %s129_s3, 4294963200  ;;  %v166_v0 = vld [vmem:[%s1131_s4] sm:$0xff]  ;;  %v167_v2 = vld [vmem:[%s1131_s4 + $0x8] sm:$0xff]  ;;  %vm157_vm0 = vcmask 523264   ;;  %s777_s18 = sshll.u32 %s1127_s26, 6  ;;  %s816_s29 = sshll.u32 %s988_s9, 10 }
  0x3b   : > { %v170_v1 = vld [vmem:[%s1131_s4 + $0x20] sm:$0xff]  ;;  %v171_v4 = vld [vmem:[%s1131_s4 + $0x28] sm:$0xff]  ;;  %v168_v30 = vld [vmem:[%s1131_s4 + $0x10] sm:$0xff]  ;;  %s1188_s27 = scalar_lea.vmem [#allocation6], %s777_s18  ;;  %s1214_s12 = scalar_lea.hbm %s1270_s1, %s816_s29 }
  0x3c   : > { %v779_v3 = vcombine.high %v166_v0, %v170_v1  ;;  %v778_v5 = vcombine.low %v166_v0, %v170_v1  ;;  %v174_v6 = vld [vmem:[%s1131_s4 + $0x40] sm:$0xff]  ;;  %v781_v8 = vcombine.high %v167_v2, %v171_v4  ;;  %v780_v9 = vcombine.low %v167_v2, %v171_v4  ;;  %v175_v11 = vld [vmem:[%s1131_s4 + $0x48] sm:$0xff]  ;;  %v172_v31 = vld [vmem:[%s1131_s4 + $0x30] sm:$0xff]  ;;  %s684_s30 = sshll.u32 %s1188_s27, 4  ;;  %s671_s9 = scalar_lea.sflag [#allocation5], %s1127_s26  ;;  %s1216_s30 = int_to_ptr.vmem [resolvable:$true] %s684_s30 }
  0x3d   : > { %v178_v7 = vld [vmem:[%s1131_s4 + $0x60] sm:$0xff]  ;;  %v179_v12 = vld [vmem:[%s1131_s4 + $0x68] sm:$0xff]  ;;  %v169_v32 = vld [vmem:[%s1131_s4 + $0x18] sm:$0xff]  ;;  %v783_v36 = vcombine.high %v168_v30, %v172_v31  ;;  %v782_v40 = vcombine.low %v168_v30, %v172_v31  ;;  %v1001_v0 = vmov 0.0   ;;  %s914_s13 = scalar_lea.vmem %s1216_s30, 1024  ;;  %p1278_p9 = scmp.ne.s32.totalorder %s1274_s19, 0 }
  0x3e   : > { %v787_v10 = vcombine.high %v174_v6, %v178_v7  ;;  %366 = vmatprep.subr.bf16.mxu0 %v779_v3  ;;  %v789_v13 = vcombine.high %v175_v11, %v179_v12  ;;  %398 = vmatprep.mubr.bf16.mxu0 %v779_v3  ;;  %v182_v14 = vld [vmem:[%s1131_s4 + $0x80] sm:$0xff]  ;;  %v183_v16 = vld [vmem:[%s1131_s4 + $0x88] sm:$0xff]  ;;  %v786_v18 = vcombine.low %v174_v6, %v178_v7  ;;  %v173_v33 = vld [vmem:[%s1131_s4 + $0x38] sm:$0xff]  ;;  %p915_p8 = scmp.ne.s32.totalorder %s1216_s30, %s914_s13  ;;  %s1002_s15 = smov [#allocation6]  }
  0x3f   : > { %431 = vmatprep.subr.bf16.mxu1 %v781_v8  ;;  %367 = vmatpush1.bf16.xpose.msra.mxu0 %v778_v5  ;;  %v186_v15 = vld [vmem:[%s1131_s4 + $0xa0] sm:$0xff]  ;;  %v187_v17 = vld [vmem:[%s1131_s4 + $0xa8] sm:$0xff]  ;;  %v788_v19 = vcombine.low %v175_v11, %v179_v12  ;;  %v785_v37 = vcombine.high %v169_v32, %v173_v33  ;;  %v176_v38 = vld [vmem:[%s1131_s4 + $0x50] sm:$0xff]  ;;  %v784_v43 = vcombine.low %v169_v32, %v173_v33  ;;  %s918_s16 = sshll.u32 %s1002_s15, 4  ;;  %s919_s16 = int_to_ptr.vmem [resolvable:$false] %s918_s16 }
  0x40   : > { %432 = vmatpush1.bf16.xpose.msra.mxu1 %v780_v9  ;;  %368 = vmatprep.subr.bf16.mxu0 %v787_v10  ;;  %v795_v20 = vcombine.high %v182_v14, %v186_v15  ;;  %v797_v21 = vcombine.high %v183_v16, %v187_v17  ;;  %v190_v22 = vld [vmem:[%s1131_s4 + $0xc0] sm:$0xff]  ;;  %v191_v24 = vld [vmem:[%s1131_s4 + $0xc8] sm:$0xff]  ;;  %v794_v26 = vcombine.low %v182_v14, %v186_v15  ;;  %v180_v39 = vld [vmem:[%s1131_s4 + $0x70] sm:$0xff]  ;;  %p916_p11 = pnand %p915_p8, %p1278_p9  ;;  %s920_s17 = scalar_lea.vmem %s919_s16, 2048 }
  0x41   : > { %433 = vmatprep.subr.bf16.mxu1 %v789_v13  ;;  %463 = vmatprep.mubr.bf16.mxu1 %v781_v8  ;;  %v194_v23 = vld [vmem:[%s1131_s4 + $0xe0] sm:$0xff]  ;;  %v195_v25 = vld [vmem:[%s1131_s4 + $0xe8] sm:$0xff]  ;;  %v796_v27 = vcombine.low %v183_v16, %v187_v17  ;;  %v177_v41 = vld [vmem:[%s1131_s4 + $0x58] sm:$0xff]  ;;  %v791_v44 = vcombine.high %v176_v38, %v180_v39  ;;  %v790_v48 = vcombine.low %v176_v38, %v180_v39  ;;  %p921_p6 = scmp.lt.s32.totalorder %s1216_s30, %s919_s16  ;;  %p922_p13 = scmp.lt.s32.totalorder %s920_s17, %s914_s13 }
  0x42   : > { %v803_v28 = vcombine.high %v190_v22, %v194_v23  ;;  %v805_v29 = vcombine.high %v191_v24, %v195_v25  ;;  %v802_v34 = vcombine.low %v190_v22, %v194_v23  ;;  %v804_v35 = vcombine.low %v191_v24, %v195_v25  ;;  %v181_v42 = vld [vmem:[%s1131_s4 + $0x78] sm:$0xff]  ;;  %v184_v46 = vld [vmem:[%s1131_s4 + $0x90] sm:$0xff]  ;;  %158 = vst.msk [vmem:[#allocation2] sm:$0xff] %vm157_vm0, %v1001_v0  ;;  %p917_p0 = pneg %p916_p11 }
  0x43   : > { %v793_v45 = vcombine.high %v177_v41, %v181_v42  ;;  %v188_v47 = vld [vmem:[%s1131_s4 + $0xb0] sm:$0xff]  ;;  %v185_v49 = vld [vmem:[%s1131_s4 + $0x98] sm:$0xff]  ;;  %v792_v51 = vcombine.low %v177_v41, %v181_v42  ;;  %159 = vst.msk [vmem:[#allocation2 + $0x8] sm:$0xff] %vm157_vm0, %v1001_v0  ;;  %160 = vst.msk [vmem:[#allocation2 + $0x10] sm:$0xff] %vm157_vm0, %v1001_v0  ;;  %p923_p2 = por %p922_p13, %p921_p6 }
  0x44   : > { %v189_v50 = vld [vmem:[%s1131_s4 + $0xb8] sm:$0xff]  ;;  %v799_v52 = vcombine.high %v184_v46, %v188_v47  ;;  %v192_v54 = vld [vmem:[%s1131_s4 + $0xd0] sm:$0xff]  ;;  %v798_v56 = vcombine.low %v184_v46, %v188_v47  ;;  %161 = vst.msk [vmem:[#allocation2 + $0x18] sm:$0xff] %vm157_vm0, %v1001_v0  ;;  %162 = vst.msk [vmem:[#allocation2 + $0x20] sm:$0xff] %vm157_vm0, %v1001_v0 }
  0x45   : > { %v801_v53 = vcombine.high %v185_v49, %v189_v50  ;;  %v196_v55 = vld [vmem:[%s1131_s4 + $0xf0] sm:$0xff]  ;;  %v193_v57 = vld [vmem:[%s1131_s4 + $0xd8] sm:$0xff]  ;;  %v800_v59 = vcombine.low %v185_v49, %v189_v50  ;;  %163 = vst.msk [vmem:[#allocation2 + $0x28] sm:$0xff] %vm157_vm0, %v1001_v0  ;;  %164 = vst.msk [vmem:[#allocation2 + $0x30] sm:$0xff] %vm157_vm0, %v1001_v0  ;;  %p924_p5 = pnand %p923_p2, %p917_p0 }
  0x46   : > { %v197_v58 = vld [vmem:[%s1131_s4 + $0xf8] sm:$0xff]  ;;  %v807_v60 = vcombine.high %v192_v54, %v196_v55  ;;  %v806_v62 = vcombine.low %v192_v54, %v196_v55  ;;  %165 = vst.msk [vmem:[#allocation2 + $0x38] sm:$0xff] %vm157_vm0, %v1001_v0 }
  0x47   : > { %369 = vmatpush1.bf16.xpose.msra.mxu0 %v786_v18  ;;  %v809_v61 = vcombine.high %v193_v57, %v197_v58  ;;  %v808_v63 = vcombine.low %v193_v57, %v197_v58 }
  0x48   : > { %434 = vmatpush1.bf16.xpose.msra.mxu1 %v788_v19  ;;  %370 = vmatprep.subr.bf16.mxu0 %v795_v20 }
  0x49   : > { %435 = vmatprep.subr.bf16.mxu1 %v797_v21 }
  0x4f   : > { %371 = vmatpush1.bf16.xpose.msra.mxu0 %v794_v26 }
  0x50   : > { %436 = vmatpush1.bf16.xpose.msra.mxu1 %v796_v27  ;;  %372 = vmatprep.subr.bf16.mxu0 %v803_v28 }
  0x51   : > { %437 = vmatprep.subr.bf16.mxu1 %v805_v29 }
  0x57   : > { %373 = vmatpush1.bf16.xpose.msra.mxu0 %v802_v34 }
  0x58   : > { %438 = vmatpush1.bf16.xpose.msra.mxu1 %v804_v35  ;;  %496 = vmatprep.subr.bf16.mxu0 %v783_v36 }
  0x59   : > { %561 = vmatprep.subr.bf16.mxu1 %v785_v37 }
  0x5e   : > { %399 = vmatmul.mubr.bf16.vlgmr.msra.gmra.mrb[0].mxu0 %v778_v5 }
  0x5f   : > { %464 = vmatmul.mubr.bf16.vlgmr.msra.gmra.mrb[0].mxu1 %v780_v9  ;;  %497 = vmatpush1.bf16.xpose.msra.mxu0 %v782_v40 }
  0x60   : > { %562 = vmatpush1.bf16.xpose.msra.mxu1 %v784_v43  ;;  %406 = vmatprep.mubr.bf16.mxu0 %v787_v10 }
  0x61   : > { %471 = vmatprep.mubr.bf16.mxu1 %v789_v13  ;;  %498 = vmatprep.subr.bf16.mxu0 %v791_v44 }
  0x62   : > { %563 = vmatprep.subr.bf16.mxu1 %v793_v45 }
  0x66   : > { %407 = vmatmul.mubr.bf16.gmra.mrb[4].mxu0 %v786_v18 }
  0x67   : > { %472 = vmatmul.mubr.bf16.gmra.mrb[4].mxu1 %v788_v19  ;;  %499 = vmatpush1.bf16.xpose.msra.mxu0 %v790_v48 }
  0x68   : > { %564 = vmatpush1.bf16.xpose.msra.mxu1 %v792_v51  ;;  %414 = vmatprep.mubr.bf16.mxu0 %v795_v20 }
  0x69   : > { %479 = vmatprep.mubr.bf16.mxu1 %v797_v21  ;;  %500 = vmatprep.subr.bf16.mxu0 %v799_v52 }
  0x6a   : > { %565 = vmatprep.subr.bf16.mxu1 %v801_v53 }
  0x6e   : > { %415 = vmatmul.mubr.bf16.gmra.mrb[8].mxu0 %v794_v26 }
  0x6f   : > { %480 = vmatmul.mubr.bf16.gmra.mrb[8].mxu1 %v796_v27  ;;  %501 = vmatpush1.bf16.xpose.msra.mxu0 %v798_v56 }
  0x70   : > { %566 = vmatpush1.bf16.xpose.msra.mxu1 %v800_v59  ;;  %422 = vmatprep.mubr.bf16.mxu0 %v803_v28 }
  0x71   : > { %487 = vmatprep.mubr.bf16.mxu1 %v805_v29  ;;  %502 = vmatprep.subr.bf16.mxu0 %v807_v60 }
  0x72   : > { %567 = vmatprep.subr.bf16.mxu1 %v809_v61 }
  0x76   : > { %423 = vmatmul.mubr.bf16.gmra.mrb[12].mxu0 %v802_v34 }
  0x77   : > { %488 = vmatmul.mubr.bf16.gmra.mrb[12].mxu1 %v804_v35  ;;  %503 = vmatpush1.bf16.xpose.msra.mxu0 %v806_v62 }
  0x78   : > { %568 = vmatpush1.bf16.xpose.msra.mxu1 %v808_v63  ;;  %528 = vmatprep.mubr.bf16.mxu0 %v783_v36 }
  0x79   : > { %593 = vmatprep.mubr.bf16.mxu1 %v785_v37 }
  0x7e   : > { %529 = vmatmul.mubr.bf16.vlgmr.msra.gmra.mrb[16].mxu0 %v782_v40 }
  0x7f   : > { %594 = vmatmul.mubr.bf16.vlgmr.msra.gmra.mrb[16].mxu1 %v784_v43  ;;  %536 = vmatprep.mubr.bf16.mxu0 %v791_v44 }
  0x80   : > { %601 = vmatprep.mubr.bf16.mxu1 %v793_v45  ;;  %v198_v45 = vld [vmem:[#allocation2] sm:$0xff] }
  0x86   : > { %537 = vmatmul.mubr.bf16.gmra.mrb[20].mxu0 %v790_v48 }
  0x87   : > { %602 = vmatmul.mubr.bf16.gmra.mrb[20].mxu1 %v792_v51  ;;  %544 = vmatprep.mubr.bf16.mxu0 %v799_v52  ;;  %v199_v52 = vld [vmem:[#allocation2 + $0x8] sm:$0xff] }
  0x88   : > { %609 = vmatprep.mubr.bf16.mxu1 %v801_v53 }
  0x8e   : > { %545 = vmatmul.mubr.bf16.gmra.mrb[24].mxu0 %v798_v56 }
  0x8f   : > { %610 = vmatmul.mubr.bf16.gmra.mrb[24].mxu1 %v800_v59  ;;  %552 = vmatprep.mubr.bf16.mxu0 %v807_v60 }
  0x90   : > { %617 = vmatprep.mubr.bf16.mxu1 %v809_v61  ;;  %v200_v61 = vld [vmem:[#allocation2 + $0x10] sm:$0xff] }
  0x96   : > { %553 = vmatmul.mubr.bf16.gmra.mrb[28].mxu0 %v806_v62 }
  0x97   : > { %618 = vmatmul.mubr.bf16.gmra.mrb[28].mxu1 %v808_v63 }
 0x131   : > { %v400_v1 = vpop.f32.mrb[0].mxu0 }
 0x132   : > { %v465_v2 = vpop.f32.mrb[0].mxu1  ;;  %v402_v3 = vpop.f32.mrb[1].mxu0 }
 0x133   : > { %v466_v4 = vadd.f32 %v465_v2, %v400_v1  ;;  %v467_v5 = vpop.f32.mrb[1].mxu1  ;;  %v403_v6 = vpop.f32.mrb[2].mxu0 }
 0x134   : > { %v468_v7 = vpop.f32.mrb[2].mxu1  ;;  %v405_v8 = vpop.f32.mrb[3].mxu0 }
 0x135   : > { %v469_v9 = vadd.f32 %v468_v7, %v403_v6  ;;  %v470_v10 = vpop.f32.mrb[3].mxu1 }
 0x139   : > { %v408_v11 = vpop.f32.mrb[4].mxu0 }
 0x13a   : > { %v473_v12 = vpop.f32.mrb[4].mxu1  ;;  %v410_v13 = vpop.f32.mrb[5].mxu0 }
 0x13b   : > { %v474_v14 = vadd.f32 %v473_v12, %v408_v11  ;;  %v475_v15 = vpop.f32.mrb[5].mxu1  ;;  %v411_v16 = vpop.f32.mrb[6].mxu0 }
 0x13c   : > { %v476_v17 = vpop.f32.mrb[6].mxu1  ;;  %v413_v18 = vpop.f32.mrb[7].mxu0 }
 0x13d   : > { %v477_v19 = vadd.f32 %v476_v17, %v411_v16  ;;  %v478_v20 = vpop.f32.mrb[7].mxu1  ;;  %v202_v17 = vld [vmem:[#allocation2 + $0x20] sm:$0xff] }
 0x141   : > { %v416_v21 = vpop.f32.mrb[8].mxu0 }
 0x142   : > { %v481_v22 = vpop.f32.mrb[8].mxu1  ;;  %v418_v23 = vpop.f32.mrb[9].mxu0 }
 0x143   : > { %v482_v24 = vadd.f32 %v481_v22, %v416_v21  ;;  %v483_v25 = vpop.f32.mrb[9].mxu1  ;;  %v419_v26 = vpop.f32.mrb[10].mxu0 }
 0x144   : > { %v484_v27 = vpop.f32.mrb[10].mxu1  ;;  %v421_v28 = vpop.f32.mrb[11].mxu0 }
 0x145   : > { %v1177_v29 = vadd.f32 %v484_v27, %v419_v26  ;;  %v486_v30 = vpop.f32.mrb[11].mxu1 }
 0x149   : > { %v424_v31 = vpop.f32.mrb[12].mxu0 }
 0x14a   : > { %v489_v32 = vpop.f32.mrb[12].mxu1  ;;  %v426_v33 = vpop.f32.mrb[13].mxu0 }
 0x14b   : > { %v1179_v34 = vadd.f32 %v489_v32, %v424_v31  ;;  %v491_v35 = vpop.f32.mrb[13].mxu1  ;;  %v427_v36 = vpop.f32.mrb[14].mxu0 }
 0x14c   : > { %v492_v37 = vpop.f32.mrb[14].mxu1  ;;  %v429_v38 = vpop.f32.mrb[15].mxu0 }
 0x14d   : > { %v1181_v39 = vadd.f32 %v492_v37, %v427_v36  ;;  %v494_v40 = vpop.f32.mrb[15].mxu1  ;;  %v204_v38 = vld [vmem:[#allocation2 + $0x30] sm:$0xff] }
 0x151   : > { %v530_v41 = vpop.f32.mrb[16].mxu0 }
 0x152   : > { %v531_v42 = vadd.f32 %v530_v41, %v466_v4  ;;  %v595_v43 = vpop.f32.mrb[16].mxu1  ;;  %v532_v44 = vpop.f32.mrb[17].mxu0  ;;  %v201_v4 = vld [vmem:[#allocation2 + $0x18] sm:$0xff] }
 0x153   : > { %v597_v46 = vpop.f32.mrb[17].mxu1  ;;  %v533_v47 = vpop.f32.mrb[18].mxu0 }
 0x154   : > { %v596_v48 = vadd.f32 %v595_v43, %v531_v42  ;;  %v534_v49 = vadd.f32 %v533_v47, %v469_v9  ;;  %v598_v50 = vpop.f32.mrb[18].mxu1  ;;  %v535_v51 = vpop.f32.mrb[19].mxu0  ;;  %v205_v46 = vld [vmem:[#allocation2 + $0x38] sm:$0xff] }
 0x155   : > { %v600_v53 = vpop.f32.mrb[19].mxu1 }
 0x156   : > { %v626_v54 = vadd.f32 %v596_v48, %v198_v45  ;;  %v599_v55 = vadd.f32 %v598_v50, %v534_v49 }
 0x158   : > { %635 = vst.msk [vmem:[#allocation2] sm:$0xff] %vm157_vm0, %v626_v54  ;;  %v627_v56 = vadd.f32 %v599_v55, %v199_v52 }
 0x159   : > { %v538_v57 = vpop.f32.mrb[20].mxu0 }
 0x15a   : > { %636 = vst.msk [vmem:[#allocation2 + $0x8] sm:$0xff] %vm157_vm0, %v627_v56  ;;  %v539_v58 = vadd.f32 %v538_v57, %v474_v14  ;;  %v603_v59 = vpop.f32.mrb[20].mxu1  ;;  %v540_v60 = vpop.f32.mrb[21].mxu0 }
 0x15b   : > { %v605_v62 = vpop.f32.mrb[21].mxu1  ;;  %v541_v63 = vpop.f32.mrb[22].mxu0 }
 0x15c   : > { %v604_v0 = vadd.f32 %v603_v59, %v539_v58  ;;  %v542_v1 = vadd.f32 %v541_v63, %v477_v19  ;;  %v606_v2 = vpop.f32.mrb[22].mxu1  ;;  %v543_v3 = vpop.f32.mrb[23].mxu0 }
 0x15d   : > { %v608_v5 = vpop.f32.mrb[23].mxu1 }
 0x15e   : > { %v628_v6 = vadd.f32 %v604_v0, %v200_v61  ;;  %v607_v7 = vadd.f32 %v606_v2, %v542_v1 }
 0x15f   : > { %v646_v8 = vld [vmem:[#allocation2] sm:$0xff] }
 0x160   : > { %v654_v9 = vmul.f32 0.0009765625, %v646_v8  ;;  %637 = vst.msk [vmem:[#allocation2 + $0x10] sm:$0xff] %vm157_vm0, %v628_v6  ;;  %v629_v10 = vadd.f32 %v607_v7, %v201_v4 }
 0x161   : > { %v647_v11 = vld [vmem:[#allocation2 + $0x8] sm:$0xff]  ;;  %v546_v12 = vpop.f32.mrb[24].mxu0 }
 0x162   : > { %v655_v13 = vmul.f32 0.0009765625, %v647_v11  ;;  %638 = vst.msk [vmem:[#allocation2 + $0x18] sm:$0xff] %vm157_vm0, %v629_v10  ;;  %v547_v14 = vadd.f32 %v546_v12, %v482_v24  ;;  %v611_v15 = vpop.f32.mrb[24].mxu1  ;;  %v548_v16 = vpop.f32.mrb[25].mxu0  ;;  %662 = vst.msk [vmem:[%s1188_s27] sm:$0xff] %vm157_vm0, %v654_v9  ;;  %v203_v24 = vld [vmem:[#allocation2 + $0x28] sm:$0xff] }
 0x163   : > { %v613_v18 = vpop.f32.mrb[25].mxu1  ;;  %v549_v19 = vpop.f32.mrb[26].mxu0 }
 0x164   : > { %v612_v20 = vadd.f32 %v611_v15, %v547_v14  ;;  %v550_v21 = vadd.f32 %v549_v19, %v1177_v29  ;;  %v614_v22 = vpop.f32.mrb[26].mxu1  ;;  %v551_v23 = vpop.f32.mrb[27].mxu0  ;;  %663 = vst.msk [vmem:[%s1188_s27 + $0x8] sm:$0xff] %vm157_vm0, %v655_v13 }
 0x165   : > { %v616_v25 = vpop.f32.mrb[27].mxu1 }
 0x166   : > { %v630_v26 = vadd.f32 %v612_v20, %v202_v17  ;;  %v615_v27 = vadd.f32 %v614_v22, %v550_v21 }
 0x167   : > { %v648_v28 = vld [vmem:[#allocation2 + $0x10] sm:$0xff] }
 0x168   : > { %v656_v30 = vmul.f32 0.0009765625, %v648_v28  ;;  %639 = vst.msk [vmem:[#allocation2 + $0x20] sm:$0xff] %vm157_vm0, %v630_v26  ;;  %v631_v31 = vadd.f32 %v615_v27, %v203_v24 }
 0x169   : > { %v649_v32 = vld [vmem:[#allocation2 + $0x18] sm:$0xff]  ;;  %v554_v33 = vpop.f32.mrb[28].mxu0 }
 0x16a   : > { %v657_v35 = vmul.f32 0.0009765625, %v649_v32  ;;  %640 = vst.msk [vmem:[#allocation2 + $0x28] sm:$0xff] %vm157_vm0, %v631_v31  ;;  %v555_v29 = vadd.f32 %v554_v33, %v1179_v34  ;;  %v619_v36 = vpop.f32.mrb[28].mxu1  ;;  %v556_v37 = vpop.f32.mrb[29].mxu0  ;;  %664 = vst.msk [vmem:[%s1188_s27 + $0x10] sm:$0xff] %vm157_vm0, %v656_v30 }
 0x16b   : > { %v621_v40 = vpop.f32.mrb[29].mxu1  ;;  %v557_v41 = vpop.f32.mrb[30].mxu0 }
 0x16c   : > { %v620_v42 = vadd.f32 %v619_v36, %v555_v29  ;;  %v558_v43 = vadd.f32 %v557_v41, %v1181_v39  ;;  %v622_v44 = vpop.f32.mrb[30].mxu1  ;;  %v559_v45 = vpop.f32.mrb[31].mxu0  ;;  %665 = vst.msk [vmem:[%s1188_s27 + $0x18] sm:$0xff] %vm157_vm0, %v657_v35 }
 0x16d   : > { %v624_v34 = vpop.f32.mrb[31].mxu1 }
 0x16e   : > { %v632_v47 = vadd.f32 %v620_v42, %v204_v38  ;;  %v623_v48 = vadd.f32 %v622_v44, %v558_v43 }
 0x16f   : > { %v650_v49 = vld [vmem:[#allocation2 + $0x20] sm:$0xff] }
 0x170   : > { %v658_v50 = vmul.f32 0.0009765625, %v650_v49  ;;  %641 = vst.msk [vmem:[#allocation2 + $0x30] sm:$0xff] %vm157_vm0, %v632_v47  ;;  %v633_v51 = vadd.f32 %v623_v48, %v205_v46 }
 0x171   : > { %v651_v39 = vld [vmem:[#allocation2 + $0x28] sm:$0xff] }
 0x172   : > { %v659_v52 = vmul.f32 0.0009765625, %v651_v39  ;;  %642 = vst.msk [vmem:[#allocation2 + $0x38] sm:$0xff] %vm157_vm0, %v633_v51  ;;  %666 = vst.msk [vmem:[%s1188_s27 + $0x20] sm:$0xff] %vm157_vm0, %v658_v50 }
 0x174   : > { %667 = vst.msk [vmem:[%s1188_s27 + $0x28] sm:$0xff] %vm157_vm0, %v659_v52 }
 0x177   : > { %v652_v53 = vld [vmem:[#allocation2 + $0x30] sm:$0xff] }
 0x178   : > { %v660_v54 = vmul.f32 0.0009765625, %v652_v53 }
 0x179   : > { %v653_v55 = vld [vmem:[#allocation2 + $0x38] sm:$0xff] }
 0x17a   : > { %v661_v56 = vmul.f32 0.0009765625, %v653_v55  ;;  %668 = vst.msk [vmem:[%s1188_s27 + $0x30] sm:$0xff] %vm157_vm0, %v660_v54 }
 0x17c   : > { %669 = vst.msk [vmem:[%s1188_s27 + $0x38] sm:$0xff] %vm157_vm0, %v661_v56 }
 0x17d   : > { %927 = shalt.err (!%p924_p5)
}
 0x17e   : > { %s928_s22 = scalar_lea.hbm %s1214_s12, 1024  ;;  %s932_s25 = scalar_lea.hbm %s1270_s1, 2048 }
 0x17f   : > { %p929_p4 = scmp.ne.s32.totalorder %s1214_s12, %s928_s22  ;;  %p933_p12 = scmp.lt.u32.totalorder %s1214_s12, %s1270_s1 }
 0x180   : > { %p934_p1 = scmp.lt.u32.totalorder %s932_s25, %s928_s22  ;;  %p936_p8 = scmp.lt.u32.totalorder %s928_s22, %s1214_s12 }
 0x181   : > { %p930_p7 = pnand %p929_p4, %p1278_p9 }
 0x182   : > { %p935_p3 = por %p934_p1, %p933_p12 }
 0x183   : > { %p931_p10 = pneg %p930_p7 }
 0x184   : > { %p937_p11 = por %p936_p8, %p935_p3 }
 0x186   : > { %p938_p0 = pnand %p937_p11, %p931_p10 }
 0x188   : > { %941 = shalt.err (!%p938_p0)
}
 0x189   : > { %s1003_s4 = smov 128   ;;  %s1004_s18 = smov 8  }
 0x18a   : > { %819 = dma.vmem_to_hbm [thread:$0]  (%p1278_p9), %s1216_s30, 1024, %s1214_s12, %s671_s9, %s1003_s4, %s1003_s4, %s1004_s18  }
 0x18b PF: > { %s699_s27 = sand.u32 1, %s976_s6   ;;  %p1279_p6 = scmp.ne.s32.totalorder %s1275_s21, 0 }
 0x18c   : > { %p1280_p13 = scmp.ge.s32.totalorder %s996_s11, 2  ;;  %s700_s29 = scalar_lea.sflag [#allocation5], %s699_s27 }
 0x18e   : > { %p826_p2 = pnand %p1280_p13, %p1279_p6 }
 0x190   : > { %971 = dma.done.wait (!%p826_p2), %s700_s29, 1024  }
 0x191   : > { %973 = vsyncadd (!%p826_p2), %s700_s29, 4294966272  ;;  %s17_s11 = sadd.s32 1, %s996_s11   ;;  %s1281_s6 = smov %s980_s7 }
 0x192   : > { %p14_p5 = scmp.ge.s32.totalorder %s17_s11, 4   ;;  %s1282_s7 = smov %s984_s8 }
 0x193   : > { %s1283_s8 = smov %s1071_s20  ;;  %s1284_s9 = smov %s992_s10 }
 0x194   : > { %s1285_s10 = smov %s1287_s14  ;;  %16 = sbr.rel (!%p14_p5) target bundleno = 6 (0x6), region = 77 }
 0x19b   :  { %705 = vsyncpa [#allocation4], 1 }
 0x19c   :  { %707 = vsyncpa [#allocation4 + $0x1], 1 }
 0x19d   :  { %708 = vsyncpa [#allocation5], 1 }
 0x19e   :  { %710 = vsyncpa [#allocation5 + $0x1], 1 }

</bundles_post_ra>
